<compile_context>
chip_gen: v7x
topology: tpu7x:2x2x1
jax: 0.10.0
libtpu: 0.0.40
codegen_flags: <defaults>
</compile_context>

<pallas_src>
import functools

import jax
import jax.numpy as jnp
from jax.experimental import pallas as pl
from jax.experimental.pallas import tpu as pltpu


# ---------------------------------------------------------------------------
# Kernel 1: linear projection (+ optional per-lane scale), computed once per
# sequence so the quadratic attention kernel never re-does it per tile.
# ---------------------------------------------------------------------------
def _proj_kernel(x_ref, w_ref, b_ref, scale_ref, out_ref, *, apply_scale):
    y = jnp.dot(x_ref[...], w_ref[...], preferred_element_type=jnp.float32)
    y = y + b_ref[...].astype(jnp.float32)
    if apply_scale:
        y = y * scale_ref[...].astype(jnp.float32)
    out_ref[...] = y.astype(out_ref.dtype)


def _project(x2d, w, b, scale, *, apply_scale, out_dtype, block_rows):
    rows, d = x2d.shape
    kernel = functools.partial(_proj_kernel, apply_scale=apply_scale)
    # NOTE: W / b / scale are constant-index blocks (only in this cheap,
    # linear-cost pass); the quadratic attention kernel below never sees them,
    # which is how the "don't double-buffer constant weights in the hot loop"
    # feedback is addressed.
    return pl.pallas_call(
        kernel,
        out_shape=jax.ShapeDtypeStruct((rows, d), out_dtype),
        grid=(rows // block_rows,),
        in_specs=[
            pl.BlockSpec((block_rows, d), lambda i: (i, 0)),   # x rows
            pl.BlockSpec((d, d), lambda i: (0, 0)),            # W     (constant)
            pl.BlockSpec((1, d), lambda i: (0, 0)),            # b     (constant)
            pl.BlockSpec((1, d), lambda i: (0, 0)),            # scale (constant)
        ],
        out_specs=pl.BlockSpec((block_rows, d), lambda i: (i, 0)),
        compiler_params=pltpu.CompilerParams(
            dimension_semantics=("parallel",),
            vmem_limit_bytes=32 * 1024 * 1024),
    )(x2d, w, b, scale)


# ---------------------------------------------------------------------------
# Kernel 2: flash-style Gaussian attention with online softmax.
#   score[i, j] = <qp_i, 2*gamma*kp_j> - gamma*||kp_j||^2
# (the per-row constant -gamma*||qp_i||^2 is dropped; softmax is shift-invariant)
# ---------------------------------------------------------------------------
def _flash_attn_kernel(qp_ref, kg_ref, v_ref, inv4g_ref, out_ref,
                       m_sc, l_sc, acc_sc, *, fast_math):
    kv = pl.program_id(2)

    @pl.when(kv == 0)
    def _():
        m_sc[...] = jnp.full_like(m_sc, -jnp.inf)
        l_sc[...] = jnp.zeros_like(l_sc)
        acc_sc[...] = jnp.zeros_like(acc_sc)

    kg = kg_ref[...]                                   # (tb, tk, D), MXU dtype
    kg_f32 = kg.astype(jnp.float32)
    # gamma-weighted key norm from kg = 2*gamma*kp:  sum gamma*kp^2 = sum kg^2/(4*gamma)
    kn = jnp.sum(kg_f32 * kg_f32 * inv4g_ref[...].astype(jnp.float32),
                 axis=-1)                              # (tb, tk)

    # Batched contraction over the lane dim (MXU, f32 accumulation); no
    # materialized transpose.
    s = jnp.einsum("bqd,bkd->bqk", qp_ref[...], kg,
                   preferred_element_type=jnp.float32)  # (tb, tq, tk)
    s = s - kn[:, None, :]

    # Online softmax update (all f32 VPU/EUP math).
    m_prev = m_sc[...]
    m_new = jnp.maximum(m_prev, jnp.max(s, axis=-1, keepdims=True))
    alpha = jnp.exp(m_prev - m_new)
    p = jnp.exp(s - m_new)
    l_sc[...] = alpha * l_sc[...] + jnp.sum(p, axis=-1, keepdims=True)
    acc_sc[...] = alpha * acc_sc[...] + jnp.einsum(
        "bqk,bkd->bqd", p.astype(v_ref.dtype), v_ref[...],
        preferred_element_type=jnp.float32)
    m_sc[...] = m_new

    @pl.when(kv == pl.num_programs(2) - 1)
    def _():
        if fast_math:
            out = acc_sc[...] * pl.reciprocal(l_sc[...], approx=True)  # EUP slot
        else:
            out = acc_sc[...] / l_sc[...]
        out_ref[...] = out.astype(out_ref.dtype)


# ---------------------------------------------------------------------------
# Tiling helpers
# ---------------------------------------------------------------------------
def _pick_seq_tile(n, target):
    """Largest divisor of n <= target that is a multiple of 128 (preferred) or 8;
    falls back to the full extent (a full block is always legal)."""
    if n <= target:
        return n
    for align in (128, 8):
        for c in range(target, align - 1, -1):
            if n % c == 0 and c % align == 0:
                return c
    return n


def _attn_step_vmem_bytes(tb, tq, tk, d, in_esz):
    qkv = 2 * (tb * tq * d + 2 * tb * tk * d) * in_esz   # qp/kg/v, double-buffered
    out = 2 * tb * tq * d * 4                            # f32 out block, double-buffered
    scr = tb * tq * d * 4 + 2 * tb * tq * 4              # acc + m + l scratch
    tmp = 3 * tb * tq * tk * 4                           # live s / p / exp tiles
    return qkv + out + scr + tmp


# ---------------------------------------------------------------------------
# Wrapper
# ---------------------------------------------------------------------------
def gaussian_attention(query, key, value, wq, bq, wk, bk, gamma, *,
                       head_num, block_q=128, block_k=128, block_b=None,
                       fast_math=True, vmem_budget_bytes=12 * 1024 * 1024):
    """query/key/value: (B, L, D) float32. Returns (B, Lq, D) float32.

    block_q / block_k default to 128; 256 can be better on v6e when fast_math
    feeds the 2x256^2 bf16 MXU. vmem_budget_bytes is kept conservative so the
    same tiling fits v5e's 16 MiB scoped default and v7x's 64 MiB physical.
    """
    b, lq, d = query.shape
    lk = key.shape[1]
    assert d % head_num == 0
    dh = d // head_num

    in_dt = jnp.bfloat16 if fast_math else jnp.float32

    # Per-head gamma broadcast onto feature lanes; 2x folded into the K side.
    g_lane = jnp.repeat(gamma.astype(jnp.float32), dh).reshape(1, d)
    g2 = 2.0 * g_lane
    inv4g = jnp.where(g_lane > 0,
                      1.0 / (4.0 * jnp.maximum(g_lane, 1e-30)), 0.0)
    bq2 = bq.reshape(1, d).astype(jnp.float32)
    bk2 = bk.reshape(1, d).astype(jnp.float32)
    ones = jnp.ones((1, d), jnp.float32)

    # ---- projections (done once; bf16 storage halves HBM traffic in fast mode)
    def _proj_rows(n_rows):
        r = _pick_seq_tile(n_rows, 512)               # ~512 rows per MXU step
        if n_rows // r < 2 and r % 16 == 0:           # >=2 programs for v7x's 2 TCs
            r //= 2
        return r

    q2d = query.reshape(b * lq, d).astype(in_dt)      # reshape in the wrapper,
    k2d = key.reshape(b * lk, d).astype(in_dt)        # never inside the kernel
    qp = _project(q2d, wq.astype(in_dt), bq2, ones, apply_scale=False,
                  out_dtype=in_dt, block_rows=_proj_rows(b * lq)).reshape(b, lq, d)
    kg = _project(k2d, wk.astype(in_dt), bk2, g2, apply_scale=True,
                  out_dtype=in_dt, block_rows=_proj_rows(b * lk)).reshape(b, lk, d)
    v = value.astype(in_dt)

    # ---- VMEM-aware tile selection for the attention kernel
    tq = _pick_seq_tile(lq, block_q)
    tk = _pick_seq_tile(lk, block_k)
    esz = 2 if fast_math else 4
    if block_b is None:
        tb = 1
        for cand in range(b, 0, -1):
            if b % cand == 0 and _attn_step_vmem_bytes(cand, tq, tk, d, esz) <= vmem_budget_bytes:
                tb = cand
                break
    else:
        tb = block_b
    assert b % tb == 0
    # keep at least 2 "parallel" programs so both v7x TensorCores get work
    while tb > 1 and (b // tb) * (lq // tq) < 2:
        tb = next((c for c in range(tb - 1, 0, -1) if b % c == 0), 1)

    grid = (b // tb, lq // tq, lk // tk)
    kernel = functools.partial(_flash_attn_kernel, fast_math=fast_math)

    return pl.pallas_call(
        kernel,
        out_shape=jax.ShapeDtypeStruct((b, lq, d), jnp.float32),
        grid=grid,
        in_specs=[
            pl.BlockSpec((tb, tq, d), lambda i, j, k: (i, j, 0)),   # qp
            pl.BlockSpec((tb, tk, d), lambda i, j, k: (i, k, 0)),   # kg
            pl.BlockSpec((tb, tk, d), lambda i, j, k: (i, k, 0)),   # value
            pl.BlockSpec((1, d), lambda i, j, k: (0, 0)),           # 1/(4*gamma)
        ],
        out_specs=pl.BlockSpec((tb, tq, d), lambda i, j, k: (i, j, 0)),
        scratch_shapes=[
            pltpu.VMEM((tb, tq, 1), jnp.float32),   # running max m
            pltpu.VMEM((tb, tq, 1), jnp.float32),   # running denom l
            pltpu.VMEM((tb, tq, d), jnp.float32),   # output accumulator
        ],
        compiler_params=pltpu.CompilerParams(
            dimension_semantics=("parallel", "parallel", "arbitrary"),
            vmem_limit_bytes=32 * 1024 * 1024),
    )(qp, kg, v, inv4g)


# ---------------------------------------------------------------------------
# Pure-JAX reference: per-head direct-subtraction Gaussian score.
# ---------------------------------------------------------------------------
def gaussian_attention_ref(query, key, value, wq, bq, wk, bk, gamma, *, head_num):
    hi = jax.lax.Precision.HIGHEST
    qp = jnp.einsum("bld,de->ble", query, wq, precision=hi) + bq
    kp = jnp.einsum("bld,de->ble", key, wk, precision=hi) + bk
    b, lq, d = qp.shape
    lk = kp.shape[1]
    dh = d // head_num
    qh = qp.reshape(b, lq, head_num, dh)
    kh = kp.reshape(b, lk, head_num, dh)
    diff = qh[:, :, None, :, :] - kh[:, None, :, :, :]      # (b, lq, lk, H, dh)
    dist = jnp.sum(diff * diff, axis=-1)                    # (b, lq, lk, H)
    score = -jnp.einsum("bqkh,h->bqk", dist, gamma)
    attn = jax.nn.softmax(score, axis=-1)
    return jnp.einsum("bqk,bkd->bqd", attn, value, precision=hi)


if __name__ == "__main__":
    # featureDim chosen as a multiple of 128 so every store is lane-dense.
    B, L, D, H = 2, 256, 128, 4   # batch, seq, featureDim, headNum

    root = jax.random.PRNGKey(0)
    kq, kk, kv_, kwq, kbq, kwk, kbk = jax.random.split(root, 7)

    query = jax.random.normal(kq, (B, L, D), jnp.float32)
    key = jax.random.normal(kk, (B, L, D), jnp.float32)
    value = jax.random.normal(kv_, (B, L, D), jnp.float32)

    scale = 1.0 / jnp.sqrt(jnp.float32(D))
    wq = jax.random.normal(kwq, (D, D), jnp.float32) * scale
    wk = jax.random.normal(kwk, (D, D), jnp.float32) * scale
    bq = jax.random.normal(kbq, (D,), jnp.float32) * 0.01
    bk = jax.random.normal(kbk, (D,), jnp.float32) * 0.01
    gamma = jnp.full((H,), 1.0 / (D // H), jnp.float32)   # per-head bandwidth

    ref = gaussian_attention_ref(query, key, value, wq, bq, wk, bk, gamma,
                                 head_num=H)

    # Precise path (f32 MXU operands, exact divide).
    out_f32 = gaussian_attention(query, key, value, wq, bq, wk, bk, gamma,
                                 head_num=H, fast_math=False)
    out_f32 = jax.block_until_ready(out_f32)
    assert out_f32.shape == (B, L, D)
    err32 = float(jnp.max(jnp.abs(out_f32 - ref)))
    assert jnp.allclose(out_f32, ref, atol=1e-4, rtol=1e-4), \
        f"f32 path max abs err {err32}"

    # Fast path (bf16 MXU operands, f32 accumulation, EUP approx reciprocal).
    out_fast = gaussian_attention(query, key, value, wq, bq, wk, bk, gamma,
                                  head_num=H, fast_math=True)
    out_fast = jax.block_until_ready(out_fast)
    errbf = float(jnp.max(jnp.abs(out_fast - ref)))
    assert jnp.allclose(out_fast, ref, atol=5e-2, rtol=5e-2), \
        f"bf16 path max abs err {errbf}"

    print("KERNEL_OK")
</pallas_src>

<mosaic_0001>
module attributes {stable_mosaic.version = 11 : i64} {
  func.func @_proj_kernel(%arg0: i32, %arg1: memref<256x128xf32, #tpu.memory_space<vmem>>, %arg2: memref<128x128xf32, #tpu.memory_space<vmem>>, %arg3: memref<1x128xf32, #tpu.memory_space<vmem>>, %arg4: memref<1x128xf32, #tpu.memory_space<vmem>>, %arg5: memref<256x128xf32, #tpu.memory_space<vmem>>) attributes {dimension_semantics = [#tpu.dimension_semantics<parallel>], iteration_bounds = array<i64: 2>, scalar_prefetch = 0 : i64, scratch_operands = 0 : i64, tpu.core_type = #tpu.core_type<tc>, window_params = [{transform_indices = @transform_0, window_bounds = array<i64: 256, 128>}, {pipeline_mode = #tpu.pipeline_mode<synchronous>, transform_indices = @transform_1, window_bounds = array<i64: 128, 128>}, {pipeline_mode = #tpu.pipeline_mode<synchronous>, transform_indices = @transform_2, window_bounds = array<i64: 1, 128>}, {pipeline_mode = #tpu.pipeline_mode<synchronous>, transform_indices = @transform_3, window_bounds = array<i64: 1, 128>}, {transform_indices = @transform_4, window_bounds = array<i64: 256, 128>}]} {
    %c0 = arith.constant 0 : index
    %c0_0 = arith.constant 0 : index
    %0 = vector.load %arg1[%c0, %c0_0] : memref<256x128xf32, #tpu.memory_space<vmem>>, vector<256x128xf32>
    %c0_1 = arith.constant 0 : index
    %c0_2 = arith.constant 0 : index
    %1 = vector.load %arg2[%c0_1, %c0_2] : memref<128x128xf32, #tpu.memory_space<vmem>>, vector<128x128xf32>
    %cst = arith.constant dense<0.000000e+00> : vector<256x128xf32>
    %2 = tpu.matmul %0, %1, %cst {dimension_numbers = #tpu.dot_dimension_numbers<[1], [0], [0], [1], [0, 0, 1, 1], [], []>} : vector<256x128xf32>, vector<128x128xf32>, vector<256x128xf32> -> vector<256x128xf32>
    %c0_3 = arith.constant 0 : index
    %c0_4 = arith.constant 0 : index
    %3 = vector.load %arg3[%c0_3, %c0_4] : memref<1x128xf32, #tpu.memory_space<vmem>>, vector<1x128xf32>
    %4 = vector.broadcast %3 : vector<1x128xf32> to vector<256x128xf32>
    %5 = arith.addf %2, %4 : vector<256x128xf32>
    %c0_5 = arith.constant 0 : index
    %c0_6 = arith.constant 0 : index
    %6 = vector.load %arg5[%c0_5, %c0_6] : memref<256x128xf32, #tpu.memory_space<vmem>>, vector<256x128xf32>
    tpu.vector_store %arg5[%c0_5, %c0_6], %5 {strides = array<i32>} : memref<256x128xf32, #tpu.memory_space<vmem>>, vector<256x128xf32>,
    return
  }
  func.func @transform_0(%arg0: i32) -> (i32, i32) {
    %c0_i32 = arith.constant 0 : i32
    %c0_i32_0 = arith.constant 0 : i32
    return %arg0, %c0_i32 : i32, i32
  }
  func.func @transform_1(%arg0: i32) -> (i32, i32) {
    %c0_i32 = arith.constant 0 : i32
    %c0_i32_0 = arith.constant 0 : i32
    %c0_i32_1 = arith.constant 0 : i32
    return %c0_i32, %c0_i32_0 : i32, i32
  }
  func.func @transform_2(%arg0: i32) -> (i32, i32) {
    %c0_i32 = arith.constant 0 : i32
    %c0_i32_0 = arith.constant 0 : i32
    %c0_i32_1 = arith.constant 0 : i32
    return %c0_i32, %c0_i32_0 : i32, i32
  }
  func.func @transform_3(%arg0: i32) -> (i32, i32) {
    %c0_i32 = arith.constant 0 : i32
    %c0_i32_0 = arith.constant 0 : i32
    %c0_i32_1 = arith.constant 0 : i32
    return %c0_i32, %c0_i32_0 : i32, i32
  }
  func.func @transform_4(%arg0: i32) -> (i32, i32) {
    %c0_i32 = arith.constant 0 : i32
    %c0_i32_0 = arith.constant 0 : i32
    return %arg0, %c0_i32 : i32, i32
  }
}

</mosaic_0001>

<bundles_post_ra>
// kernel: tpu_custom_call.1
= control target key start
LH: loop header
LB: loop body
LE: loop exit
PB: predicated region body
PF: predicated region fallthrough
CT: control target
= control target key end

     0   :  { %9 = vsyncpa [#allocation3], 0  ;;  %s1377_s0 = inlined_call_operand.hbm [shape: f32[512,128], index: 0, kind: input, shape index: {}]   ;;  %s1378_s1 = inlined_call_operand.hbm [shape: f32[128,128], index: 1, kind: input, shape index: {}]   ;;  %s1379_s2 = inlined_call_operand.vmem [shape: f32[1,128], index: 2, kind: input, shape index: {}]   ;;  %s1380_s3 = inlined_call_operand.vmem [shape: f32[1,128], index: 3, kind: input, shape index: {}]   ;;  %s1381_s4 = inlined_call_operand.hbm [shape: f32[512,128], index: 4, kind: output, shape index: {}]  }
   0x1   :  { %11 = vsyncpa [#allocation3 + $0x1], 0 }
   0x2   :  { %12 = vsyncpa [#allocation6], 0 }
   0x3   :  { %13 = vsyncpa [#allocation4], 0 }
   0x4   :  { %15 = vsyncpa [#allocation4 + $0x1], 0  ;;  %s1060_s15 = smov 0   ;;  %s1062_s16 = smov 0  }
   0x5   :  { %s1064_s17 = smov 0   ;;  %s1066_s18 = smov 0  }
   0x6 LB: > { %s1081_s3 = sadd.s32 4294967295, %s1026_s18   ;;  %s642_s19 = sadd.s32 4294967294, %s1026_s18   ;;  %s1026_s18 = sphi %s1066_s18, %s1401_s18   ;;  %s1022_s17 = sphi %s1064_s17, %s1400_s17   ;;  %s1018_s16 = sphi %s1062_s16, %s1399_s16   ;;  %s1014_s15 = sphi %s1060_s15, %s1398_s15  }
   0x7   : > { %p41_p0 = scmp.ne.s32.totalorder %s1018_s16, %s1014_s15  ;;  %p1382_p1 = scmp.eq.s32.totalorder %s1081_s3, 0 }
   0x8   : > { %p134_p3 = scmp.eq.s32.totalorder %s642_s19, 1  ;;  %p643_p5 = scmp.ge.s32.totalorder %s1026_s18, 1 }
   0x9   : > { %p1090_p4 = por %p1382_p1, %p41_p0  ;;  %p141_p7 = scmp.lt.s32.totalorder %s1026_s18, 3 }
   0xa   : > { %p1095_p6 = por %p134_p3, %p41_p0  ;;  %s1028_s23 = smov [#allocation5]  }
   0xb   : > { %s1385_s20 = scalar_select %p1090_p4, 1, 0 }
   0xc   : > { %s1386_s21 = scalar_select %p1095_p6, 1, 0 }
   0xd   : > { %p1100_p8 = pnand %p643_p5, %p141_p7  ;;  %s153_s24 = sshll.u32 %s1028_s23, 4  ;;  %s1104_s24 = int_to_ptr.vmem [resolvable:$true] %s153_s24 }
   0xe   : > { %s1116_s26 = sadd.s32 1, %s1026_s18   ;;  %s28_s27 = sadd.s32 1, %s1022_s17 }
   0xf   : > { %s1387_s22 = scalar_select %p1100_p8, 1, 0 }
  0x10   : > { %p845_p9 = pneg %p1100_p8  ;;  %s25_s28 = ssub.s32 %s1026_s18, %s1116_s26 }
  0x11   : > { %s898_s5 = scalar_lea.hbm %s1378_s1, 2048 }
  0x12   : > { %p1111_p11 = pnand %p845_p9, %p1382_p1  ;;  %p899_p12 = scmp.ne.s32.totalorder %s1378_s1, %s898_s5 }
  0x13   : > { %p905_p5 = scmp.lt.u32.totalorder %s898_s5, %s1378_s1 }
  0x14   : > { %p900_p13 = pneg %p1111_p11 }
  0x16   : > { %p901_p0 = pnand %p900_p13, %p899_p12 }
  0x18   : > { %p902_p3 = pneg %p901_p0 }
  0x1a   : > { %p907_p7 = pnand %p905_p5, %p902_p3 }
  0x1c   : > { %910 = shalt.err (!%p907_p7)
}
  0x1d   : > { %s911_s10 = scalar_lea.vmem %s1104_s24, 2048  ;;  %p919_p2 = scmp.lt.s32.totalorder %s1104_s24, %s1104_s24 }
  0x1e   : > { %p912_p9 = scmp.ne.s32.totalorder %s1104_s24, %s911_s10  ;;  %p920_p6 = scmp.lt.s32.totalorder %s911_s10, %s911_s10 }
  0x20   : > { %p914_p10 = pnand %p912_p9, %p900_p13  ;;  %p921_p4 = por %p920_p6, %p919_p2 }
  0x22   : > { %p915_p1 = pneg %p914_p10 }
  0x24   : > { %p922_p8 = pnand %p921_p4, %p915_p1 }
  0x26   : > { %925 = shalt.err (!%p922_p8)
}
  0x27   : > { %s1029_s11 = smov 128   ;;  %s1030_s12 = smov 8  }
  0x28   : > { %848 = dma.hbm_to_vmem [thread:$0]  (!%p1111_p11), %s1378_s1, 2048, %s1104_s24, [#allocation6], %s1029_s11, %s1029_s11, %s1030_s12  }
  0x29   : > { %p26_p1 = scmp.eq.s32.totalorder %s25_s28, 0  ;;  %p35_p2 = scmp.ne.s32.totalorder %s1022_s17, %s1018_s16 }
  0x2a   : > { %p36_p4 = scmp.eq.s32.totalorder %s1026_s18, 0  ;;  %p858_p6 = scmp.lt.s32.totalorder %s1026_s18, 2 }
  0x2b   : > { %s1150_s19 = scalar_select %p26_p1, %s1022_s17, %s28_s27  }
  0x2c   : > { %p37_p8 = por %p36_p4, %p35_p2  ;;  %p1389_p10 = scmp.eq.s32.totalorder %s1081_s3, 1 }
  0x2d   : > { %s173_s25 = sand.u32 1, %s1022_s17   ;;  %s659_s29 = sshll.u32 %s1026_s18, 12 }
  0x2e   : > { %p1154_p12 = por %p1389_p10, %p35_p2  ;;  %s646_s30 = sshll.u32 %s173_s25, 8 }
  0x2f   : > { %s1163_s7 = scalar_lea.hbm %s1377_s0, %s659_s29  ;;  %s177_s24 = scalar_lea.vmem [#allocation2], %s646_s30 }
  0x30   : > { %s184_s27 = sshll.u32 %s177_s24, 4  ;;  %p1165_p11 = pnand %p858_p6, %p37_p8  ;;  %s1169_s27 = int_to_ptr.vmem [resolvable:$true] %s184_s27 }
  0x31   : > { %s1171_s8 = scalar_lea.sflag [#allocation3], %s173_s25  ;;  %s926_s9 = scalar_lea.hbm %s1163_s7, 4096 }
  0x32   : > { %p927_p13 = scmp.ne.s32.totalorder %s1163_s7, %s926_s9  ;;  %p928_p0 = pneg %p1165_p11 }
  0x33   : > { %s931_s14 = scalar_lea.hbm %s1377_s0, 8192  ;;  %p932_p7 = scmp.lt.u32.totalorder %s1163_s7, %s1377_s0 }
  0x34   : > { %p929_p3 = pnand %p928_p0, %p927_p13  ;;  %p933_p9 = scmp.lt.u32.totalorder %s931_s14, %s926_s9 }
  0x35   : > { %p935_p2 = scmp.lt.u32.totalorder %s926_s9, %s1163_s7 }
  0x36   : > { %p930_p5 = pneg %p929_p3  ;;  %p934_p1 = por %p933_p9, %p932_p7 }
  0x38   : > { %p936_p4 = por %p935_p2, %p934_p1 }
  0x3a   : > { %p937_p6 = pnand %p936_p4, %p930_p5 }
  0x3c   : > { %940 = shalt.err (!%p937_p6)
}
  0x3d   : > { %s941_s25 = scalar_lea.vmem %s1169_s27, 4096  ;;  %s1031_s5 = smov [#allocation2]  }
  0x3e   : > { %p942_p8 = scmp.ne.s32.totalorder %s1169_s27, %s941_s25  ;;  %s946_s6 = sshll.u32 %s1031_s5, 4  ;;  %s947_s6 = int_to_ptr.vmem [resolvable:$false] %s946_s6 }
  0x3f   : > { %s948_s24 = scalar_lea.vmem %s947_s6, 8192  ;;  %p949_p3 = scmp.lt.s32.totalorder %s1169_s27, %s947_s6 }
  0x40   : > { %p944_p10 = pnand %p942_p8, %p928_p0  ;;  %p950_p7 = scmp.lt.s32.totalorder %s948_s24, %s941_s25 }
  0x42   : > { %p945_p13 = pneg %p944_p10  ;;  %p951_p9 = por %p950_p7, %p949_p3 }
  0x44   : > { %p952_p1 = pnand %p951_p9, %p945_p13 }
  0x46   : > { %955 = shalt.err (!%p952_p1)
}
  0x47   : > { %852 = dma.hbm_to_vmem [thread:$0]  (!%p1165_p11), %s1163_s7, 4096, %s1169_s27, %s1171_s8, %s1029_s11, %s1029_s11, %s1030_s12  }
  0x48   : > { %p1392_p0 = scmp.ne.s32.totalorder %s1387_s22, 0 }
  0x49   : > { %s1205_s9 = sand.u32 (!%p1392_p0), 1, %s1018_s16   ;;  %p1393_p5 = scmp.ne.s32.totalorder (!%p1392_p0), %s1385_s20, 0 }
  0x4a   : > { %196 = sbr.rel (%p1392_p0) target bundleno = 378 (0x17a), region = 36  ;;  %s650_s10 = sshll.u32 (!%p1392_p0), %s1205_s9, 8 }
  0x4b   : > { %s199_s13 = scalar_lea.sflag (!%p1392_p0), [#allocation3], %s1205_s9  ;;  %s1211_s28 = scalar_lea.vmem (!%p1392_p0), [#allocation2], %s650_s10 }
  0x51   : > { %1001 = dma.done.wait (%p1393_p5), %s199_s13, 4096  }
  0x52   : > { %1003 = vsyncadd (%p1393_p5), %s199_s13, 4294963200  ;;  %p1394_p11 = scmp.eq.s32.totalorder %s1081_s3, 0 }
  0x54   : > { %1005 = dma.done.wait (%p1394_p11), [#allocation6], 2048   ;;  %p1395_p2 = pmov %p1394_p11 }
  0x55   : > { %v265_v0 = vld [vmem:[#allocation5] sm:$0xff]  ;;  %v266_v1 = vld [vmem:[#allocation5 + $0x8] sm:$0xff]  ;;  %v267_v2 = vld [vmem:[#allocation5 + $0x10] sm:$0xff]  ;;  %s1264_s11 = scalar_lea.vmem [#allocation7], %s650_s10  ;;  %s660_s12 = sshll.u32 %s1081_s3, 12 }
  0x56   : > { %1007 = vsyncadd (%p1395_p2), [#allocation6], 4294965248  ;;  %v789_v3 = vpack.c.bf16 %v266_v1, %v265_v0  ;;  %v268_v4 = vld [vmem:[#allocation5 + $0x18] sm:$0xff]  ;;  %v269_v6 = vld [vmem:[#allocation5 + $0x20] sm:$0xff]  ;;  %s559_s7 = sshll.u32 %s1264_s11, 4  ;;  %s1325_s8 = scalar_lea.hbm %s1381_s4, %s660_s12  ;;  %s1327_s7 = int_to_ptr.vmem [resolvable:$true] %s559_s7 }
  0x57   : > { %v793_v5 = vpack.c.bf16 %v268_v4, %v267_v2  ;;  %v270_v7 = vld [vmem:[#allocation5 + $0x28] sm:$0xff]  ;;  %v233_v9 = vld [vmem:[%s1211_s28] sm:$0xff]  ;;  %v271_v11 = vld [vmem:[#allocation5 + $0x30] sm:$0xff]  ;;  %s546_s14 = scalar_lea.sflag [#allocation4], %s1205_s9  ;;  %s956_s29 = scalar_lea.vmem %s1327_s7, 4096 }
  0x58   : > { %790 = vmatprep.subr.bf16.mxu0 %v789_v3  ;;  %821 = vmatprep.subr.bf16.mxu1 %v789_v3  ;;  %v797_v8 = vpack.c.bf16 %v270_v7, %v269_v6  ;;  %v249_v10 = vld [vmem:[%s1211_s28 + $0x80] sm:$0xff]  ;;  %v272_v12 = vld [vmem:[#allocation5 + $0x38] sm:$0xff]  ;;  %v274_v15 = vld [vmem:[#allocation5 + $0x48] sm:$0xff]  ;;  %p957_p4 = scmp.ne.s32.totalorder %s1327_s7, %s956_s29  ;;  %s1032_s30 = smov [#allocation7]  }
  0x59   : > { %792 = vmatpush3.bf16.msra.mxu0 %v789_v3  ;;  %829 = vmatpush3.bf16.msra.mxu1 %v789_v3  ;;  %v801_v13 = vpack.c.bf16 %v272_v12, %v271_v11  ;;  %v273_v14 = vld [vmem:[#allocation5 + $0x40] sm:$0xff]  ;;  %v275_v17 = vld [vmem:[#allocation5 + $0x50] sm:$0xff]  ;;  %v276_v18 = vld [vmem:[#allocation5 + $0x58] sm:$0xff]  ;;  %s960_s25 = sshll.u32 %s1032_s30, 4  ;;  %s961_s25 = int_to_ptr.vmem [resolvable:$false] %s960_s25 }
  0x5a   : > { %794 = vmatprep.subr.bf16.mxu0 %v793_v5  ;;  %822 = vmatprep.subr.bf16.mxu1 %v793_v5  ;;  %v805_v16 = vpack.c.bf16 %v274_v15, %v273_v14  ;;  %v809_v19 = vpack.c.bf16 %v276_v18, %v275_v17  ;;  %v277_v20 = vld [vmem:[#allocation5 + $0x60] sm:$0xff]  ;;  %v278_v21 = vld [vmem:[#allocation5 + $0x68] sm:$0xff]  ;;  %v279_v23 = vld [vmem:[#allocation5 + $0x70] sm:$0xff]  ;;  %p958_p6 = pnand %p957_p4, %p1154_p12  ;;  %s962_s5 = scalar_lea.vmem %s961_s25, 8192 }
  0x5b   : > { %741 = vmatprep.mubr.f32.mxu0 %v233_v9  ;;  %765 = vmatprep.mubr.f32.mxu1 %v249_v10  ;;  %v813_v22 = vpack.c.bf16 %v278_v21, %v277_v20  ;;  %v280_v24 = vld [vmem:[#allocation5 + $0x78] sm:$0xff]  ;;  %v234_v26 = vld [vmem:[%s1211_s28 + $0x8] sm:$0xff]  ;;  %v235_v28 = vld [vmem:[%s1211_s28 + $0x10] sm:$0xff]  ;;  %p963_p10 = scmp.lt.s32.totalorder %s1327_s7, %s961_s25  ;;  %p964_p13 = scmp.lt.s32.totalorder %s962_s5, %s956_s29 }
  0x5c   : > { %v817_v25 = vpack.c.bf16 %v280_v24, %v279_v23  ;;  %v250_v27 = vld [vmem:[%s1211_s28 + $0x88] sm:$0xff]  ;;  %v251_v29 = vld [vmem:[%s1211_s28 + $0x90] sm:$0xff]  ;;  %v236_v30 = vld [vmem:[%s1211_s28 + $0x18] sm:$0xff]  ;;  %p959_p8 = pneg %p958_p6 }
  0x5d   : > { %796 = vmatpush3.bf16.msra.mxu0 %v793_v5  ;;  %830 = vmatpush3.bf16.msra.mxu1 %v793_v5  ;;  %v252_v31 = vld [vmem:[%s1211_s28 + $0x98] sm:$0xff]  ;;  %v237_v32 = vld [vmem:[%s1211_s28 + $0x20] sm:$0xff]  ;;  %v238_v34 = vld [vmem:[%s1211_s28 + $0x28] sm:$0xff]  ;;  %p965_p3 = por %p964_p13, %p963_p10 }
  0x5e   : > { %798 = vmatprep.subr.bf16.mxu0 %v797_v8  ;;  %823 = vmatprep.subr.bf16.mxu1 %v797_v8  ;;  %v253_v33 = vld [vmem:[%s1211_s28 + $0xa0] sm:$0xff]  ;;  %v254_v35 = vld [vmem:[%s1211_s28 + $0xa8] sm:$0xff]  ;;  %v239_v36 = vld [vmem:[%s1211_s28 + $0x30] sm:$0xff] }
  0x5f   : > { %v255_v37 = vld [vmem:[%s1211_s28 + $0xb0] sm:$0xff]  ;;  %v240_v38 = vld [vmem:[%s1211_s28 + $0x38] sm:$0xff]  ;;  %v241_v40 = vld [vmem:[%s1211_s28 + $0x40] sm:$0xff]  ;;  %p966_p7 = pnand %p965_p3, %p959_p8 }
  0x60   : > { %v256_v39 = vld [vmem:[%s1211_s28 + $0xb8] sm:$0xff]  ;;  %v257_v41 = vld [vmem:[%s1211_s28 + $0xc0] sm:$0xff]  ;;  %v242_v42 = vld [vmem:[%s1211_s28 + $0x48] sm:$0xff] }
  0x61   : > { %800 = vmatpush3.bf16.msra.mxu0 %v797_v8  ;;  %831 = vmatpush3.bf16.msra.mxu1 %v797_v8  ;;  %v258_v43 = vld [vmem:[%s1211_s28 + $0xc8] sm:$0xff]  ;;  %v243_v44 = vld [vmem:[%s1211_s28 + $0x50] sm:$0xff]  ;;  %v244_v46 = vld [vmem:[%s1211_s28 + $0x58] sm:$0xff] }
  0x62   : > { %802 = vmatprep.subr.bf16.mxu0 %v801_v13  ;;  %824 = vmatprep.subr.bf16.mxu1 %v801_v13  ;;  %v259_v45 = vld [vmem:[%s1211_s28 + $0xd0] sm:$0xff]  ;;  %v260_v47 = vld [vmem:[%s1211_s28 + $0xd8] sm:$0xff]  ;;  %v245_v48 = vld [vmem:[%s1211_s28 + $0x60] sm:$0xff] }
  0x63   : > { %v261_v49 = vld [vmem:[%s1211_s28 + $0xe0] sm:$0xff]  ;;  %v246_v50 = vld [vmem:[%s1211_s28 + $0x68] sm:$0xff]  ;;  %v247_v52 = vld [vmem:[%s1211_s28 + $0x70] sm:$0xff] }
  0x64   : > { %v262_v51 = vld [vmem:[%s1211_s28 + $0xe8] sm:$0xff]  ;;  %v263_v53 = vld [vmem:[%s1211_s28 + $0xf0] sm:$0xff]  ;;  %v248_v54 = vld [vmem:[%s1211_s28 + $0x78] sm:$0xff] }
  0x65   : > { %804 = vmatpush3.bf16.msra.mxu0 %v801_v13  ;;  %832 = vmatpush3.bf16.msra.mxu1 %v801_v13  ;;  %v264_v55 = vld [vmem:[%s1211_s28 + $0xf8] sm:$0xff]  ;;  %v1256_v56 = vld [vmem:[%s1379_s2] ss:$0 sm:$0xff] }
  0x66   : > { %806 = vmatprep.subr.bf16.mxu0 %v805_v16  ;;  %825 = vmatprep.subr.bf16.mxu1 %v805_v16 }
  0x69   : > { %808 = vmatpush3.bf16.msra.mxu0 %v805_v16  ;;  %833 = vmatpush3.bf16.msra.mxu1 %v805_v16 }
  0x6a   : > { %810 = vmatprep.subr.bf16.mxu0 %v809_v19  ;;  %826 = vmatprep.subr.bf16.mxu1 %v809_v19 }
  0x6d   : > { %812 = vmatpush3.bf16.msra.mxu0 %v809_v19  ;;  %834 = vmatpush3.bf16.msra.mxu1 %v809_v19 }
  0x6e   : > { %814 = vmatprep.subr.bf16.mxu0 %v813_v22  ;;  %827 = vmatprep.subr.bf16.mxu1 %v813_v22 }
  0x71   : > { %816 = vmatpush3.bf16.msra.mxu0 %v813_v22  ;;  %835 = vmatpush3.bf16.msra.mxu1 %v813_v22 }
  0x72   : > { %818 = vmatprep.subr.bf16.mxu0 %v817_v25  ;;  %828 = vmatprep.subr.bf16.mxu1 %v817_v25 }
  0x75   : > { %820 = vmatpush3.bf16.msra.mxu0 %v817_v25  ;;  %836 = vmatpush3.bf16.msra.mxu1 %v817_v25 }
  0x78   : > { %742 = vmatmul.mubr.f32.vlgmr.msra.gmra.mrb[0].mxu0 %v234_v26  ;;  %766 = vmatmul.mubr.f32.vlgmr.msra.gmra.mrb[0].mxu1 %v250_v27 }
  0x79   : > { %744 = vmatprep.mubr.f32.mxu0 %v235_v28  ;;  %768 = vmatprep.mubr.f32.mxu1 %v251_v29 }
  0x7c   : > { %745 = vmatmul.mubr.f32.gmra.mrb[2].mxu0 %v236_v30  ;;  %769 = vmatmul.mubr.f32.gmra.mrb[2].mxu1 %v252_v31 }
  0x7d   : > { %747 = vmatprep.mubr.f32.mxu0 %v237_v32  ;;  %771 = vmatprep.mubr.f32.mxu1 %v253_v33 }
  0x80   : > { %748 = vmatmul.mubr.f32.gmra.mrb[4].mxu0 %v238_v34  ;;  %772 = vmatmul.mubr.f32.gmra.mrb[4].mxu1 %v254_v35 }
  0x81   : > { %750 = vmatprep.mubr.f32.mxu0 %v239_v36  ;;  %774 = vmatprep.mubr.f32.mxu1 %v255_v37 }
  0x84   : > { %751 = vmatmul.mubr.f32.gmra.mrb[6].mxu0 %v240_v38  ;;  %775 = vmatmul.mubr.f32.gmra.mrb[6].mxu1 %v256_v39 }
  0x85   : > { %753 = vmatprep.mubr.f32.mxu0 %v241_v40  ;;  %777 = vmatprep.mubr.f32.mxu1 %v257_v41 }
  0x88   : > { %754 = vmatmul.mubr.f32.gmra.mrb[8].mxu0 %v242_v42  ;;  %778 = vmatmul.mubr.f32.gmra.mrb[8].mxu1 %v258_v43 }
  0x89   : > { %756 = vmatprep.mubr.f32.mxu0 %v243_v44  ;;  %780 = vmatprep.mubr.f32.mxu1 %v259_v45 }
  0x8c   : > { %757 = vmatmul.mubr.f32.gmra.mrb[10].mxu0 %v244_v46  ;;  %781 = vmatmul.mubr.f32.gmra.mrb[10].mxu1 %v260_v47 }
  0x8d   : > { %759 = vmatprep.mubr.f32.mxu0 %v245_v48  ;;  %783 = vmatprep.mubr.f32.mxu1 %v261_v49 }
  0x90   : > { %760 = vmatmul.mubr.f32.gmra.mrb[12].mxu0 %v246_v50  ;;  %784 = vmatmul.mubr.f32.gmra.mrb[12].mxu1 %v262_v51 }
  0x91   : > { %762 = vmatprep.mubr.f32.mxu0 %v247_v52  ;;  %786 = vmatprep.mubr.f32.mxu1 %v263_v53 }
  0x94   : > { %763 = vmatmul.mubr.f32.gmra.mrb[14].mxu0 %v248_v54  ;;  %787 = vmatmul.mubr.f32.gmra.mrb[14].mxu1 %v264_v55 }
 0x14b   : > { %v743_v57 = vpop.f32.mrb[0].mxu0  ;;  %v767_v58 = vpop.f32.mrb[0].mxu1 }
 0x14c   : > { %v360_v59 = vadd.f32 %v743_v57, %v1256_v56  ;;  %v440_v60 = vadd.f32 %v767_v58, %v1256_v56  ;;  %v354_v61 = vpop.f32.mrb[1].mxu0  ;;  %v434_v62 = vpop.f32.mrb[1].mxu1 }
 0x14d   : > { %v355_v63 = vadd.f32 %v1256_v56, %v354_v61  ;;  %v435_v0 = vadd.f32 %v1256_v56, %v434_v62 }
 0x14e   : > { %514 = vst [vmem:[%s1264_s11 + $0x8] sm:$0xff] %v360_v59  ;;  %530 = vst [vmem:[%s1264_s11 + $0x88] sm:$0xff] %v440_v60 }
 0x14f   : > { %513 = vst [vmem:[%s1264_s11] sm:$0xff] %v355_v63  ;;  %529 = vst [vmem:[%s1264_s11 + $0x80] sm:$0xff] %v435_v0  ;;  %v746_v1 = vpop.f32.mrb[2].mxu0  ;;  %v770_v2 = vpop.f32.mrb[2].mxu1 }
 0x150   : > { %v370_v3 = vadd.f32 %v746_v1, %v1256_v56  ;;  %v450_v4 = vadd.f32 %v770_v2, %v1256_v56  ;;  %v364_v5 = vpop.f32.mrb[3].mxu0  ;;  %v444_v6 = vpop.f32.mrb[3].mxu1 }
 0x151   : > { %v365_v7 = vadd.f32 %v1256_v56, %v364_v5  ;;  %v445_v8 = vadd.f32 %v1256_v56, %v444_v6 }
 0x152   : > { %516 = vst [vmem:[%s1264_s11 + $0x18] sm:$0xff] %v370_v3  ;;  %532 = vst [vmem:[%s1264_s11 + $0x98] sm:$0xff] %v450_v4 }
 0x153   : > { %515 = vst [vmem:[%s1264_s11 + $0x10] sm:$0xff] %v365_v7  ;;  %531 = vst [vmem:[%s1264_s11 + $0x90] sm:$0xff] %v445_v8  ;;  %v749_v9 = vpop.f32.mrb[4].mxu0  ;;  %v773_v10 = vpop.f32.mrb[4].mxu1 }
 0x154   : > { %v380_v11 = vadd.f32 %v749_v9, %v1256_v56  ;;  %v460_v12 = vadd.f32 %v773_v10, %v1256_v56  ;;  %v374_v13 = vpop.f32.mrb[5].mxu0  ;;  %v454_v14 = vpop.f32.mrb[5].mxu1 }
 0x155   : > { %v375_v15 = vadd.f32 %v1256_v56, %v374_v13  ;;  %v455_v16 = vadd.f32 %v1256_v56, %v454_v14 }
 0x156   : > { %518 = vst [vmem:[%s1264_s11 + $0x28] sm:$0xff] %v380_v11  ;;  %534 = vst [vmem:[%s1264_s11 + $0xa8] sm:$0xff] %v460_v12 }
 0x157   : > { %517 = vst [vmem:[%s1264_s11 + $0x20] sm:$0xff] %v375_v15  ;;  %533 = vst [vmem:[%s1264_s11 + $0xa0] sm:$0xff] %v455_v16  ;;  %v752_v17 = vpop.f32.mrb[6].mxu0  ;;  %v776_v18 = vpop.f32.mrb[6].mxu1 }
 0x158   : > { %v390_v19 = vadd.f32 %v752_v17, %v1256_v56  ;;  %v470_v20 = vadd.f32 %v776_v18, %v1256_v56  ;;  %v384_v21 = vpop.f32.mrb[7].mxu0  ;;  %v464_v22 = vpop.f32.mrb[7].mxu1 }
 0x159   : > { %v385_v23 = vadd.f32 %v1256_v56, %v384_v21  ;;  %v465_v24 = vadd.f32 %v1256_v56, %v464_v22 }
 0x15a   : > { %520 = vst [vmem:[%s1264_s11 + $0x38] sm:$0xff] %v390_v19  ;;  %536 = vst [vmem:[%s1264_s11 + $0xb8] sm:$0xff] %v470_v20 }
 0x15b   : > { %519 = vst [vmem:[%s1264_s11 + $0x30] sm:$0xff] %v385_v23  ;;  %535 = vst [vmem:[%s1264_s11 + $0xb0] sm:$0xff] %v465_v24  ;;  %v755_v25 = vpop.f32.mrb[8].mxu0  ;;  %v779_v26 = vpop.f32.mrb[8].mxu1 }
 0x15c   : > { %v400_v27 = vadd.f32 %v755_v25, %v1256_v56  ;;  %v480_v28 = vadd.f32 %v779_v26, %v1256_v56  ;;  %v394_v29 = vpop.f32.mrb[9].mxu0  ;;  %v474_v30 = vpop.f32.mrb[9].mxu1 }
 0x15d   : > { %v395_v31 = vadd.f32 %v1256_v56, %v394_v29  ;;  %v475_v32 = vadd.f32 %v1256_v56, %v474_v30 }
 0x15e   : > { %522 = vst [vmem:[%s1264_s11 + $0x48] sm:$0xff] %v400_v27  ;;  %538 = vst [vmem:[%s1264_s11 + $0xc8] sm:$0xff] %v480_v28 }
 0x15f   : > { %521 = vst [vmem:[%s1264_s11 + $0x40] sm:$0xff] %v395_v31  ;;  %537 = vst [vmem:[%s1264_s11 + $0xc0] sm:$0xff] %v475_v32  ;;  %v758_v33 = vpop.f32.mrb[10].mxu0  ;;  %v782_v34 = vpop.f32.mrb[10].mxu1 }
 0x160   : > { %v410_v35 = vadd.f32 %v758_v33, %v1256_v56  ;;  %v490_v36 = vadd.f32 %v782_v34, %v1256_v56  ;;  %v404_v37 = vpop.f32.mrb[11].mxu0  ;;  %v484_v38 = vpop.f32.mrb[11].mxu1 }
 0x161   : > { %v405_v39 = vadd.f32 %v1256_v56, %v404_v37  ;;  %v485_v40 = vadd.f32 %v1256_v56, %v484_v38 }
 0x162   : > { %524 = vst [vmem:[%s1264_s11 + $0x58] sm:$0xff] %v410_v35  ;;  %540 = vst [vmem:[%s1264_s11 + $0xd8] sm:$0xff] %v490_v36 }
 0x163   : > { %523 = vst [vmem:[%s1264_s11 + $0x50] sm:$0xff] %v405_v39  ;;  %539 = vst [vmem:[%s1264_s11 + $0xd0] sm:$0xff] %v485_v40  ;;  %v761_v41 = vpop.f32.mrb[12].mxu0  ;;  %v785_v42 = vpop.f32.mrb[12].mxu1 }
 0x164   : > { %v420_v43 = vadd.f32 %v761_v41, %v1256_v56  ;;  %v500_v44 = vadd.f32 %v785_v42, %v1256_v56  ;;  %v414_v45 = vpop.f32.mrb[13].mxu0  ;;  %v494_v46 = vpop.f32.mrb[13].mxu1 }
 0x165   : > { %v415_v47 = vadd.f32 %v1256_v56, %v414_v45  ;;  %v495_v48 = vadd.f32 %v1256_v56, %v494_v46 }
 0x166   : > { %526 = vst [vmem:[%s1264_s11 + $0x68] sm:$0xff] %v420_v43  ;;  %542 = vst [vmem:[%s1264_s11 + $0xe8] sm:$0xff] %v500_v44 }
 0x167   : > { %525 = vst [vmem:[%s1264_s11 + $0x60] sm:$0xff] %v415_v47  ;;  %541 = vst [vmem:[%s1264_s11 + $0xe0] sm:$0xff] %v495_v48  ;;  %v764_v49 = vpop.f32.mrb[14].mxu0  ;;  %v788_v50 = vpop.f32.mrb[14].mxu1 }
 0x168   : > { %v430_v51 = vadd.f32 %v764_v49, %v1256_v56  ;;  %v510_v52 = vadd.f32 %v788_v50, %v1256_v56  ;;  %v424_v53 = vpop.f32.mrb[15].mxu0  ;;  %v504_v54 = vpop.f32.mrb[15].mxu1 }
 0x169   : > { %v425_v55 = vadd.f32 %v1256_v56, %v424_v53  ;;  %v505_v57 = vadd.f32 %v1256_v56, %v504_v54 }
 0x16a   : > { %528 = vst [vmem:[%s1264_s11 + $0x78] sm:$0xff] %v430_v51  ;;  %544 = vst [vmem:[%s1264_s11 + $0xf8] sm:$0xff] %v510_v52 }
 0x16b   : > { %527 = vst [vmem:[%s1264_s11 + $0x70] sm:$0xff] %v425_v55  ;;  %543 = vst [vmem:[%s1264_s11 + $0xf0] sm:$0xff] %v505_v57 }
 0x16c   : > { %969 = shalt.err (!%p966_p7)
}
 0x16d   : > { %s970_s6 = scalar_lea.hbm %s1325_s8, 4096  ;;  %s974_s13 = scalar_lea.hbm %s1381_s4, 8192 }
 0x16e   : > { %p971_p9 = scmp.ne.s32.totalorder %s1325_s8, %s970_s6  ;;  %p975_p5 = scmp.lt.u32.totalorder %s1325_s8, %s1381_s4 }
 0x16f   : > { %p976_p11 = scmp.lt.u32.totalorder %s974_s13, %s970_s6  ;;  %p978_p4 = scmp.lt.u32.totalorder %s970_s6, %s1325_s8 }
 0x170   : > { %p972_p1 = pnand %p971_p9, %p1154_p12 }
 0x171   : > { %p977_p2 = por %p976_p11, %p975_p5 }
 0x172   : > { %p973_p0 = pneg %p972_p1 }
 0x173   : > { %p979_p6 = por %p978_p4, %p977_p2 }
 0x175   : > { %p980_p8 = pnand %p979_p6, %p973_p0 }
 0x177   : > { %983 = shalt.err (!%p980_p8)
}
 0x178   : > { %s1033_s22 = smov 128   ;;  %s1034_s11 = smov 8  }
 0x179   : > { %843 = dma.vmem_to_hbm [thread:$0]  (%p1154_p12), %s1327_s7, 4096, %s1325_s8, %s546_s14, %s1033_s22, %s1033_s22, %s1034_s11  }
 0x17a PF: > { %s574_s12 = sand.u32 1, %s1014_s15   ;;  %p1396_p10 = scmp.ne.s32.totalorder %s1386_s21, 0 }
 0x17b   : > { %p1397_p13 = scmp.ge.s32.totalorder %s1026_s18, 2  ;;  %s575_s3 = scalar_lea.sflag [#allocation4], %s574_s12 }
 0x17d   : > { %p854_p3 = pnand %p1397_p13, %p1396_p10 }
 0x17f   : > { %1009 = dma.done.wait (!%p854_p3), %s575_s3, 4096  }
 0x180   : > { %1011 = vsyncadd (!%p854_p3), %s575_s3, 4294963200  ;;  %p18_p7 = scmp.ge.s32.totalorder %s1116_s26, 4   ;;  %s1398_s15 = smov %s1018_s16 }
 0x181   : > { %s1399_s16 = smov %s1022_s17  ;;  %s1400_s17 = smov %s1150_s19 }
 0x182   : > { %s1401_s18 = smov %s1116_s26  ;;  %20 = sbr.rel (!%p18_p7) target bundleno = 6 (0x6), region = 85 }
 0x189   :  { %580 = vsyncpa [#allocation3], 1 }
 0x18a   :  { %582 = vsyncpa [#allocation3 + $0x1], 1 }
 0x18b   :  { %583 = vsyncpa [#allocation6], 1 }
 0x18c   :  { %584 = vsyncpa [#allocation4], 1 }
 0x18d   :  { %586 = vsyncpa [#allocation4 + $0x1], 1 }

</bundles_post_ra>
